<compile_context>
chip_gen: v7x
topology: tpu7x:2x2x1
jax: 0.10.0
libtpu: 0.0.40
codegen_flags: <defaults>
</compile_context>

<pallas_src>
import functools

import jax
import jax.numpy as jnp
import numpy as np
from jax.experimental import pallas as pl
from jax.experimental.pallas import tpu as pltpu

EPS = 1e-08
REG_LAMBDA = 2.0


def _simclr_kernel(view0_ref, view1_ref, o_ref, *, inv_temperature,
                   block_rows):
    """One grid step: anchor rows [r0, r0+tm) against both full views."""
    tm = block_rows
    r0 = pl.multiple_of(pl.program_id(0) * tm, tm)

    a_f32 = view0_ref[pl.ds(r0, tm), :]          # anchor tile   [tm, dim] f32
    p_f32 = view1_ref[pl.ds(r0, tm), :]          # positive tile [tm, dim] f32

    # Native bf16 MXU operands, f32 accumulation.  The contrast matrix
    # [view0; view1] is never materialized: two half-matmuls contracting the
    # last dims of both operands (no transpose of the contrast block).
    a_bf = a_f32.astype(jnp.bfloat16)
    v0_bf = view0_ref[...].astype(jnp.bfloat16)  # [b, dim]
    v1_bf = view1_ref[...].astype(jnp.bfloat16)  # [b, dim]
    dn = (((1,), (1,)), ((), ()))
    dot0 = jax.lax.dot_general(a_bf, v0_bf, dn,
                               preferred_element_type=jnp.float32)  # [tm, b]
    dot1 = jax.lax.dot_general(a_bf, v1_bf, dn,
                               preferred_element_type=jnp.float32)  # [tm, b]
    # 1/temperature applied to the f32 outputs (not rounded through bf16).
    dot0 = dot0 * inv_temperature
    dot1 = dot1 * inv_temperature

    row_max = jnp.maximum(jnp.max(dot0, axis=1, keepdims=True),
                          jnp.max(dot1, axis=1, keepdims=True))     # [tm, 1]

    # Exact f32 row-wise dots for the two diagonal terms: self-similarity
    # (column r0+i of half 0, excluded by logits_mask) and the single positive
    # pair (column b+r0+i of half 1).  No iota/compare/select masks needed.
    self_logit = jnp.sum(a_f32 * a_f32, axis=1,
                         keepdims=True) * inv_temperature           # [tm, 1]
    pos_logit = jnp.sum(a_f32 * p_f32, axis=1,
                        keepdims=True) * inv_temperature            # [tm, 1]

    exp0_sum = jnp.sum(jnp.exp(dot0 - row_max), axis=1, keepdims=True)
    exp1_sum = jnp.sum(jnp.exp(dot1 - row_max), axis=1, keepdims=True)
    denom = exp0_sum - jnp.exp(self_logit - row_max) + exp1_sum     # [tm, 1]

    # The positive mask has exactly one nonzero per row, so
    # sum(mask*log_prob)/sum(mask) is the positive log-probability itself.
    log_prob_pos = (pos_logit - row_max) - jnp.log(denom)           # [tm, 1]

    partial = jnp.sum(log_prob_pos)
    o_ref[...] = jnp.broadcast_to(partial, o_ref.shape).astype(o_ref.dtype)


def _pick_block_rows(b):
    # Cap at 128: a full MXU tile on v5e and safe for v7x's 64 MiB per-TC VMEM;
    # larger tm only shaves per-grid-step overhead.
    for tm in (128, 64, 32, 16, 8):
        if b % tm == 0:
            return tm
    return b  # b not a multiple of 8: single (sublane-masked) tile.


def _build_call(b, dim, tm, num_tiles, temperature, single_buffer):
    kernel = functools.partial(_simclr_kernel,
                               inv_temperature=1.0 / float(temperature),
                               block_rows=tm)

    view_spec_kwargs = {}
    if single_buffer:
        # Constant index_map: double-buffering only doubles the views' VMEM
        # footprint, so request a single buffer.
        view_spec_kwargs["pipeline_mode"] = pl.Buffered(1)
    in_specs = [
        pl.BlockSpec((b, dim), lambda i: (0, 0), **view_spec_kwargs),
        pl.BlockSpec((b, dim), lambda i: (0, 0), **view_spec_kwargs),
    ]

    # Explicit VMEM budget from the real working set (default scoped limits
    # are well below physical), with headroom, capped at v7x's 64 MiB per TC.
    nbuf = 1 if single_buffer else 2
    est = 4 * (2 * b * dim * nbuf)            # f32 view buffers
    est += 2 * (2 * b * dim)                  # bf16 copies of both views
    est += 4 * (12 * tm * b + 6 * tm * dim)   # live f32 temporaries
    est += 2 * (8 * 128 * 4) * 2              # lane-dense output blocks
    vmem_limit = int(min(max(2 * est, 32 << 20), 64 << 20))

    return pl.pallas_call(
        kernel,
        out_shape=jax.ShapeDtypeStruct((num_tiles, 8, 128), jnp.float32),
        grid_spec=pltpu.PrefetchScalarGridSpec(
            num_scalar_prefetch=0,
            grid=(num_tiles,),
            in_specs=in_specs,
            out_specs=pl.BlockSpec((1, 8, 128), lambda i: (i, 0, 0)),
        ),
        compiler_params=pltpu.CompilerParams(
            dimension_semantics=("parallel",),
            vmem_limit_bytes=vmem_limit,
        ),
    )


def simclr_loss(features, temperature):
    """features: [b, 2, dim] float32 -> scalar SimCLR loss (f32)."""
    b, n, dim = features.shape
    assert n == 2
    view0 = features[:, 0, :]     # anchor view  [b, dim]
    view1 = features[:, 1, :]     # second view  [b, dim]

    tm = _pick_block_rows(b)
    num_tiles = b // tm

    try:
        call = _build_call(b, dim, tm, num_tiles, temperature,
                           single_buffer=True)
        partials = jax.block_until_ready(call(view0, view1))
    except Exception:
        # pl.Buffered(1) unsupported on this backend/version: fall back to the
        # default (double-buffered) pipeline mode.
        call = _build_call(b, dim, tm, num_tiles, temperature,
                           single_buffer=False)
        partials = jax.block_until_ready(call(view0, view1))

    # Tiny final reduction over per-tile partial sums of log_prob_pos.
    pos_term = -jnp.sum(partials[:, 0, 0]) / b

    # logits_entropy is data-independent: after row-max subtraction every
    # logit is <= 0 < EPS, so clamp(min=EPS) maps the whole [b, 2b] tile to
    # EPS and entropy == -2b * EPS * log(EPS) exactly.
    eps = jnp.float32(EPS)
    logits_entropy = -(2.0 * b) * eps * jnp.log(eps)

    # The torch module's "diff entropy" block is dead code (never feeds the
    # returned loss) and is intentionally not computed.
    return pos_term + REG_LAMBDA * logits_entropy


def _simclr_loss_ref(features, temperature):
    """Pure-JAX reference mirroring the PyTorch forward exactly."""
    b, n, dim = features.shape
    anchor = features[:, 0]
    contrast = jnp.concatenate([features[:, 0], features[:, 1]], axis=0)

    dot = jnp.matmul(anchor, contrast.T,
                     precision=jax.lax.Precision.HIGHEST) / temperature
    logits = dot - jnp.max(dot, axis=1, keepdims=True)
    x_ = jnp.maximum(logits, EPS)                       # torch.clamp(min=EPS)
    logits_entropy = -jnp.mean(jnp.sum(x_ * jnp.log(x_), axis=1))

    mask = jnp.tile(jnp.eye(b, dtype=jnp.float32), (1, 2))
    logits_mask = jnp.ones((b, 2 * b), jnp.float32).at[
        jnp.arange(b), jnp.arange(b)].set(0.0)
    mask = mask * logits_mask
    exp_logits = jnp.exp(logits) * logits_mask
    log_prob = logits - jnp.log(jnp.sum(exp_logits, axis=1, keepdims=True))
    loss = -jnp.mean(jnp.sum(mask * log_prob, axis=1) / jnp.sum(mask, axis=1))
    return loss + REG_LAMBDA * logits_entropy


if __name__ == "__main__":
    key = jax.random.PRNGKey(0)
    b, dim = 8, 128
    temperature = 0.5
    raw = jax.random.normal(key, (b, 2, dim), dtype=jnp.float32)
    # SimCLR operates on L2-normalized embeddings.  Unnormalized gaussian
    # features make the reference (and the torch module) softmax underflow to
    # 0 * inf = NaN, so the test uses the valid input regime.
    features = raw / jnp.linalg.norm(raw, axis=-1, keepdims=True)

    loss = jax.block_until_ready(simclr_loss(features, temperature))
    ref = jax.block_until_ready(_simclr_loss_ref(features, temperature))

    # Kernel uses bf16 MXU operands (f32 accumulate); reference is HIGHEST f32.
    np.testing.assert_allclose(np.asarray(loss), np.asarray(ref),
                               rtol=1e-2, atol=1e-3)
    print("KERNEL_OK")
</pallas_src>

<mosaic_0001>
module attributes {stable_mosaic.version = 11 : i64} {
  func.func @_simclr_kernel(%arg0: i32, %arg1: memref<8x128xf32, #tpu.memory_space<vmem>>, %arg2: memref<8x128xf32, #tpu.memory_space<vmem>>, %arg3: memref<1x8x128xf32, #tpu.memory_space<vmem>>) attributes {dimension_semantics = [#tpu.dimension_semantics<parallel>], iteration_bounds = array<i64: 1>, scalar_prefetch = 0 : i64, scratch_operands = 0 : i64, tpu.core_type = #tpu.core_type<tc>, window_params = [{pipeline_mode = #tpu.pipeline_mode<synchronous>, transform_indices = @transform_0, window_bounds = array<i64: 8, 128>}, {pipeline_mode = #tpu.pipeline_mode<synchronous>, transform_indices = @transform_1, window_bounds = array<i64: 8, 128>}, {transform_indices = @transform_2, window_bounds = array<i64: 1, 8, 128>}]} {
    %c8_i32 = arith.constant 8 : i32
    %0 = arith.muli %arg0, %c8_i32 : i32
    %1 = tpu.assume_multiple %0, 8 : i32
    %2 = arith.index_cast %1 : i32 to index
    %c0 = arith.constant 0 : index
    %3 = vector.load %arg1[%2, %c0] : memref<8x128xf32, #tpu.memory_space<vmem>>, vector<8x128xf32>
    %4 = arith.index_cast %1 : i32 to index
    %c0_0 = arith.constant 0 : index
    %5 = vector.load %arg2[%4, %c0_0] : memref<8x128xf32, #tpu.memory_space<vmem>>, vector<8x128xf32>
    %6 = arith.truncf %3 : vector<8x128xf32> to vector<8x128xbf16>
    %c0_1 = arith.constant 0 : index
    %c0_2 = arith.constant 0 : index
    %7 = vector.load %arg1[%c0_1, %c0_2] : memref<8x128xf32, #tpu.memory_space<vmem>>, vector<8x128xf32>
    %8 = arith.truncf %7 : vector<8x128xf32> to vector<8x128xbf16>
    %c0_3 = arith.constant 0 : index
    %c0_4 = arith.constant 0 : index
    %9 = vector.load %arg2[%c0_3, %c0_4] : memref<8x128xf32, #tpu.memory_space<vmem>>, vector<8x128xf32>
    %10 = arith.truncf %9 : vector<8x128xf32> to vector<8x128xbf16>
    %cst = arith.constant dense<0.000000e+00> : vector<8x8xf32>
    %11 = tpu.matmul %6, %8, %cst {dimension_numbers = #tpu.dot_dimension_numbers<[1], [1], [0], [0], [0, 0, 1, 0], [], []>} : vector<8x128xbf16>, vector<8x128xbf16>, vector<8x8xf32> -> vector<8x8xf32>
    %cst_5 = arith.constant dense<0.000000e+00> : vector<8x8xf32>
    %12 = tpu.matmul %6, %10, %cst_5 {dimension_numbers = #tpu.dot_dimension_numbers<[1], [1], [0], [0], [0, 0, 1, 0], [], []>} : vector<8x128xbf16>, vector<8x128xbf16>, vector<8x8xf32> -> vector<8x8xf32>
    %cst_6 = arith.constant 2.000000e+00 : f32
    %13 = vector.broadcast %cst_6 : f32 to vector<8x8xf32>
    %14 = arith.mulf %11, %13 : vector<8x8xf32>
    %cst_7 = arith.constant 2.000000e+00 : f32
    %15 = vector.broadcast %cst_7 : f32 to vector<8x8xf32>
    %16 = arith.mulf %12, %15 : vector<8x8xf32>
    %cst_8 = arith.constant dense<0xFF800000> : vector<8xf32>
    %17 = vector.multi_reduction <maximumf>, %14, %cst_8 [1] : vector<8x8xf32> to vector<8xf32>
    %18 = vector.shape_cast %17 : vector<8xf32> to vector<8x1xf32>
    %cst_9 = arith.constant dense<0xFF800000> : vector<8xf32>
    %19 = vector.multi_reduction <maximumf>, %16, %cst_9 [1] : vector<8x8xf32> to vector<8xf32>
    %20 = vector.shape_cast %19 : vector<8xf32> to vector<8x1xf32>
    %21 = arith.maximumf %18, %20 : vector<8x1xf32>
    %22 = arith.mulf %3, %3 : vector<8x128xf32>
    %cst_10 = arith.constant dense<0.000000e+00> : vector<8xf32>
    %23 = vector.multi_reduction <add>, %22, %cst_10 [1] : vector<8x128xf32> to vector<8xf32>
    %24 = vector.shape_cast %23 : vector<8xf32> to vector<8x1xf32>
    %cst_11 = arith.constant 2.000000e+00 : f32
    %25 = vector.broadcast %cst_11 : f32 to vector<8x1xf32>
    %26 = arith.mulf %24, %25 : vector<8x1xf32>
    %27 = arith.mulf %3, %5 : vector<8x128xf32>
    %cst_12 = arith.constant dense<0.000000e+00> : vector<8xf32>
    %28 = vector.multi_reduction <add>, %27, %cst_12 [1] : vector<8x128xf32> to vector<8xf32>
    %29 = vector.shape_cast %28 : vector<8xf32> to vector<8x1xf32>
    %cst_13 = arith.constant 2.000000e+00 : f32
    %30 = vector.broadcast %cst_13 : f32 to vector<8x1xf32>
    %31 = arith.mulf %29, %30 : vector<8x1xf32>
    %32 = vector.broadcast %21 : vector<8x1xf32> to vector<8x8xf32>
    %33 = arith.subf %14, %32 : vector<8x8xf32>
    %34 = math.exp %33 : vector<8x8xf32>
    %cst_14 = arith.constant dense<0.000000e+00> : vector<8xf32>
    %35 = vector.multi_reduction <add>, %34, %cst_14 [1] : vector<8x8xf32> to vector<8xf32>
    %36 = vector.shape_cast %35 : vector<8xf32> to vector<8x1xf32>
    %37 = vector.broadcast %21 : vector<8x1xf32> to vector<8x8xf32>
    %38 = arith.subf %16, %37 : vector<8x8xf32>
    %39 = math.exp %38 : vector<8x8xf32>
    %cst_15 = arith.constant dense<0.000000e+00> : vector<8xf32>
    %40 = vector.multi_reduction <add>, %39, %cst_15 [1] : vector<8x8xf32> to vector<8xf32>
    %41 = vector.shape_cast %40 : vector<8xf32> to vector<8x1xf32>
    %42 = arith.subf %26, %21 : vector<8x1xf32>
    %43 = math.exp %42 : vector<8x1xf32>
    %44 = arith.subf %36, %43 : vector<8x1xf32>
    %45 = arith.addf %44, %41 : vector<8x1xf32>
    %46 = arith.subf %31, %21 : vector<8x1xf32>
    %47 = math.log %45 : vector<8x1xf32>
    %48 = arith.subf %46, %47 : vector<8x1xf32>
    %49 = vector.shape_cast %48 : vector<8x1xf32> to vector<1x8x1xf32>
    %cst_16 = arith.constant dense<0.000000e+00> : vector<1xf32>
    %50 = vector.multi_reduction <add>, %49, %cst_16 [1, 2] : vector<1x8x1xf32> to vector<1xf32>
    %51 = vector.shape_cast %50 : vector<1xf32> to vector<1x1x1xf32>
    %52 = vector.extract %51[0, 0, 0] : f32 from vector<1x1x1xf32>
    %53 = vector.broadcast %52 : f32 to vector<1x8x128xf32>
    %c0_17 = arith.constant 0 : index
    %c0_18 = arith.constant 0 : index
    %c0_19 = arith.constant 0 : index
    %54 = vector.load %arg3[%c0_17, %c0_18, %c0_19] : memref<1x8x128xf32, #tpu.memory_space<vmem>>, vector<1x8x128xf32>
    tpu.vector_store %arg3[%c0_17, %c0_18, %c0_19], %53 {strides = array<i32>} : memref<1x8x128xf32, #tpu.memory_space<vmem>>, vector<1x8x128xf32>,
    return
  }
  func.func @transform_0(%arg0: i32) -> (i32, i32) {
    %c0_i32 = arith.constant 0 : i32
    %c0_i32_0 = arith.constant 0 : i32
    %c0_i32_1 = arith.constant 0 : i32
    return %c0_i32, %c0_i32_0 : i32, i32
  }
  func.func @transform_1(%arg0: i32) -> (i32, i32) {
    %c0_i32 = arith.constant 0 : i32
    %c0_i32_0 = arith.constant 0 : i32
    %c0_i32_1 = arith.constant 0 : i32
    return %c0_i32, %c0_i32_0 : i32, i32
  }
  func.func @transform_2(%arg0: i32) -> (i32, i32, i32) {
    %c0_i32 = arith.constant 0 : i32
    %c0_i32_0 = arith.constant 0 : i32
    %c0_i32_1 = arith.constant 0 : i32
    return %arg0, %c0_i32, %c0_i32_0 : i32, i32, i32
  }
}

module attributes {stable_mosaic.version = 11 : i64} {
  func.func @_simclr_kernel(%arg0: i32, %arg1: memref<8x128xf32, #tpu.memory_space<vmem>>, %arg2: memref<8x128xf32, #tpu.memory_space<vmem>>, %arg3: memref<1x8x128xf32, #tpu.memory_space<vmem>>) attributes {dimension_semantics = [#tpu.dimension_semantics<parallel>], iteration_bounds = array<i64: 1>, scalar_prefetch = 0 : i64, scratch_operands = 0 : i64, tpu.core_type = #tpu.core_type<tc>, window_params = [{pipeline_mode = #tpu.pipeline_mode<synchronous>, transform_indices = @transform_0, window_bounds = array<i64: 8, 128>}, {pipeline_mode = #tpu.pipeline_mode<synchronous>, transform_indices = @transform_1, window_bounds = array<i64: 8, 128>}, {transform_indices = @transform_2, window_bounds = array<i64: 1, 8, 128>}]} {
    %c8_i32 = arith.constant 8 : i32
    %0 = arith.muli %arg0, %c8_i32 : i32
    %1 = tpu.assume_multiple %0, 8 : i32
    %2 = arith.index_cast %1 : i32 to index
    %c0 = arith.constant 0 : index
    %3 = vector.load %arg1[%2, %c0] : memref<8x128xf32, #tpu.memory_space<vmem>>, vector<8x128xf32>
    %4 = arith.index_cast %1 : i32 to index
    %c0_0 = arith.constant 0 : index
    %5 = vector.load %arg2[%4, %c0_0] : memref<8x128xf32, #tpu.memory_space<vmem>>, vector<8x128xf32>
    %6 = arith.truncf %3 : vector<8x128xf32> to vector<8x128xbf16>
    %c0_1 = arith.constant 0 : index
    %c0_2 = arith.constant 0 : index
    %7 = vector.load %arg1[%c0_1, %c0_2] : memref<8x128xf32, #tpu.memory_space<vmem>>, vector<8x128xf32>
    %8 = arith.truncf %7 : vector<8x128xf32> to vector<8x128xbf16>
    %c0_3 = arith.constant 0 : index
    %c0_4 = arith.constant 0 : index
    %9 = vector.load %arg2[%c0_3, %c0_4] : memref<8x128xf32, #tpu.memory_space<vmem>>, vector<8x128xf32>
    %10 = arith.truncf %9 : vector<8x128xf32> to vector<8x128xbf16>
    %cst = arith.constant dense<0.000000e+00> : vector<8x8xf32>
    %11 = tpu.matmul %6, %8, %cst {dimension_numbers = #tpu.dot_dimension_numbers<[1], [1], [0], [0], [0, 0, 1, 0], [], []>} : vector<8x128xbf16>, vector<8x128xbf16>, vector<8x8xf32> -> vector<8x8xf32>
    %cst_5 = arith.constant dense<0.000000e+00> : vector<8x8xf32>
    %12 = tpu.matmul %6, %10, %cst_5 {dimension_numbers = #tpu.dot_dimension_numbers<[1], [1], [0], [0], [0, 0, 1, 0], [], []>} : vector<8x128xbf16>, vector<8x128xbf16>, vector<8x8xf32> -> vector<8x8xf32>
    %cst_6 = arith.constant 2.000000e+00 : f32
    %13 = vector.broadcast %cst_6 : f32 to vector<8x8xf32>
    %14 = arith.mulf %11, %13 : vector<8x8xf32>
    %cst_7 = arith.constant 2.000000e+00 : f32
    %15 = vector.broadcast %cst_7 : f32 to vector<8x8xf32>
    %16 = arith.mulf %12, %15 : vector<8x8xf32>
    %cst_8 = arith.constant dense<0xFF800000> : vector<8xf32>
    %17 = vector.multi_reduction <maximumf>, %14, %cst_8 [1] : vector<8x8xf32> to vector<8xf32>
    %18 = vector.shape_cast %17 : vector<8xf32> to vector<8x1xf32>
    %cst_9 = arith.constant dense<0xFF800000> : vector<8xf32>
    %19 = vector.multi_reduction <maximumf>, %16, %cst_9 [1] : vector<8x8xf32> to vector<8xf32>
    %20 = vector.shape_cast %19 : vector<8xf32> to vector<8x1xf32>
    %21 = arith.maximumf %18, %20 : vector<8x1xf32>
    %22 = arith.mulf %3, %3 : vector<8x128xf32>
    %cst_10 = arith.constant dense<0.000000e+00> : vector<8xf32>
    %23 = vector.multi_reduction <add>, %22, %cst_10 [1] : vector<8x128xf32> to vector<8xf32>
    %24 = vector.shape_cast %23 : vector<8xf32> to vector<8x1xf32>
    %cst_11 = arith.constant 2.000000e+00 : f32
    %25 = vector.broadcast %cst_11 : f32 to vector<8x1xf32>
    %26 = arith.mulf %24, %25 : vector<8x1xf32>
    %27 = arith.mulf %3, %5 : vector<8x128xf32>
    %cst_12 = arith.constant dense<0.000000e+00> : vector<8xf32>
    %28 = vector.multi_reduction <add>, %27, %cst_12 [1] : vector<8x128xf32> to vector<8xf32>
    %29 = vector.shape_cast %28 : vector<8xf32> to vector<8x1xf32>
    %cst_13 = arith.constant 2.000000e+00 : f32
    %30 = vector.broadcast %cst_13 : f32 to vector<8x1xf32>
    %31 = arith.mulf %29, %30 : vector<8x1xf32>
    %32 = vector.broadcast %21 : vector<8x1xf32> to vector<8x8xf32>
    %33 = arith.subf %14, %32 : vector<8x8xf32>
    %34 = math.exp %33 : vector<8x8xf32>
    %cst_14 = arith.constant dense<0.000000e+00> : vector<8xf32>
    %35 = vector.multi_reduction <add>, %34, %cst_14 [1] : vector<8x8xf32> to vector<8xf32>
    %36 = vector.shape_cast %35 : vector<8xf32> to vector<8x1xf32>
    %37 = vector.broadcast %21 : vector<8x1xf32> to vector<8x8xf32>
    %38 = arith.subf %16, %37 : vector<8x8xf32>
    %39 = math.exp %38 : vector<8x8xf32>
    %cst_15 = arith.constant dense<0.000000e+00> : vector<8xf32>
    %40 = vector.multi_reduction <add>, %39, %cst_15 [1] : vector<8x8xf32> to vector<8xf32>
    %41 = vector.shape_cast %40 : vector<8xf32> to vector<8x1xf32>
    %42 = arith.subf %26, %21 : vector<8x1xf32>
    %43 = math.exp %42 : vector<8x1xf32>
    %44 = arith.subf %36, %43 : vector<8x1xf32>
    %45 = arith.addf %44, %41 : vector<8x1xf32>
    %46 = arith.subf %31, %21 : vector<8x1xf32>
    %47 = math.log %45 : vector<8x1xf32>
    %48 = arith.subf %46, %47 : vector<8x1xf32>
    %49 = vector.shape_cast %48 : vector<8x1xf32> to vector<1x8x1xf32>
    %cst_16 = arith.constant dense<0.000000e+00> : vector<1xf32>
    %50 = vector.multi_reduction <add>, %49, %cst_16 [1, 2] : vector<1x8x1xf32> to vector<1xf32>
    %51 = vector.shape_cast %50 : vector<1xf32> to vector<1x1x1xf32>
    %52 = vector.extract %51[0, 0, 0] : f32 from vector<1x1x1xf32>
    %53 = vector.broadcast %52 : f32 to vector<1x8x128xf32>
    %c0_17 = arith.constant 0 : index
    %c0_18 = arith.constant 0 : index
    %c0_19 = arith.constant 0 : index
    %54 = vector.load %arg3[%c0_17, %c0_18, %c0_19] : memref<1x8x128xf32, #tpu.memory_space<vmem>>, vector<1x8x128xf32>
    tpu.vector_store %arg3[%c0_17, %c0_18, %c0_19], %53 {strides = array<i32>} : memref<1x8x128xf32, #tpu.memory_space<vmem>>, vector<1x8x128xf32>,
    return
  }
  func.func @transform_0(%arg0: i32) -> (i32, i32) {
    %c0_i32 = arith.constant 0 : i32
    %c0_i32_0 = arith.constant 0 : i32
    %c0_i32_1 = arith.constant 0 : i32
    return %c0_i32, %c0_i32_0 : i32, i32
  }
  func.func @transform_1(%arg0: i32) -> (i32, i32) {
    %c0_i32 = arith.constant 0 : i32
    %c0_i32_0 = arith.constant 0 : i32
    %c0_i32_1 = arith.constant 0 : i32
    return %c0_i32, %c0_i32_0 : i32, i32
  }
  func.func @transform_2(%arg0: i32) -> (i32, i32, i32) {
    %c0_i32 = arith.constant 0 : i32
    %c0_i32_0 = arith.constant 0 : i32
    %c0_i32_1 = arith.constant 0 : i32
    return %arg0, %c0_i32, %c0_i32_0 : i32, i32, i32
  }
}

</mosaic_0001>

<bundles_post_ra>
// kernel: tpu_custom_call.1
= control target key start
LH: loop header
LB: loop body
LE: loop exit
PB: predicated region body
PF: predicated region fallthrough
CT: control target
= control target key end

     0   :  { %7 = vsyncpa [#allocation3], 0  ;;  %s358_s0 = inlined_call_operand.hbm [shape: f32[8,128], index: 0, kind: input, shape index: {}]   ;;  %s359_s1 = inlined_call_operand.hbm [shape: f32[8,128], index: 1, kind: input, shape index: {}]   ;;  %s360_s2 = inlined_call_operand.hbm [shape: f32[1,8,128], index: 2, kind: output, shape index: {}]  }
   0x1   :  { %8 = vsyncpa [#allocation6], 0 }
   0x2   :  { %9 = vsyncpa [#allocation4], 0  ;;  %s298_s9 = smov [#allocation2]   ;;  %s299_s11 = smov [#allocation5]  }
   0x3   :  { %s16_s10 = sshll.u32 %s298_s9, 4  ;;  %s26_s12 = sshll.u32 %s299_s11, 4  ;;  %s17_s10 = int_to_ptr.vmem [resolvable:$true] %s16_s10  ;;  %s27_s12 = int_to_ptr.vmem [resolvable:$true] %s26_s12 }
   0x4   :  { %s226_s15 = scalar_lea.hbm %s358_s0, 128 }
   0x5   :  { %p227_p0 = scmp.ne.s32.totalorder %s358_s0, %s226_s15  ;;  %p230_p1 = scmp.lt.u32.totalorder %s226_s15, %s358_s0 }
   0x7   :  { %p232_p2 = pnand %p230_p1, %p227_p0 }
   0x9   :  { %235 = shalt.err (!%p232_p2)
}
   0xa   :  { %s236_s20 = scalar_lea.vmem %s17_s10, 128  ;;  %p241_p4 = scmp.lt.s32.totalorder %s17_s10, %s17_s10 }
   0xb   :  { %p237_p3 = scmp.ne.s32.totalorder %s17_s10, %s236_s20  ;;  %p242_p5 = scmp.lt.s32.totalorder %s236_s20, %s236_s20 }
   0xd   :  { %p243_p6 = por %p242_p5, %p241_p4 }
   0xf   :  { %p244_p7 = pnand %p243_p6, %p237_p3 }
  0x11   :  { %247 = shalt.err (!%p244_p7)
}
  0x12   :  { %19 = dma.hbm_to_vmem [thread:$0]  %s358_s0, 128, %s17_s10, [#allocation3]  }
  0x13   :  { %s248_s25 = scalar_lea.hbm %s359_s1, 128 }
  0x14   :  { %p249_p8 = scmp.ne.s32.totalorder %s359_s1, %s248_s25  ;;  %p252_p9 = scmp.lt.u32.totalorder %s248_s25, %s359_s1 }
  0x16   :  { %p254_p10 = pnand %p252_p9, %p249_p8 }
  0x18   :  { %257 = shalt.err (!%p254_p10)
}
  0x19   :  { %s258_s30 = scalar_lea.vmem %s27_s12, 128  ;;  %p263_p12 = scmp.lt.s32.totalorder %s27_s12, %s27_s12 }
  0x1a   :  { %p259_p11 = scmp.ne.s32.totalorder %s27_s12, %s258_s30  ;;  %p264_p13 = scmp.lt.s32.totalorder %s258_s30, %s258_s30 }
  0x1c   :  { %p265_p0 = por %p264_p13, %p263_p12 }
  0x1e   :  { %p266_p1 = pnand %p265_p0, %p259_p11 }
  0x20   :  { %269 = shalt.err (!%p266_p1)
}
  0x21   :  { %29 = dma.hbm_to_vmem [thread:$0]  %s359_s1, 128, %s27_s12, [#allocation6]  }
  0x22   :  { %292 = dma.done.wait [#allocation3], 128  }
  0x23   :  { %293 = vsyncadd [#allocation3], 4294967168 }
  0x24   :  { %294 = dma.done.wait [#allocation6], 128  }
  0x25   :  { %295 = vsyncadd [#allocation6], 4294967168  ;;  %v300_v0 = vmov 0.0   ;;  %vm301_vm0 = vmmov 0   ;;  %v43_v1 = vld [vmem:[#allocation2] sm:$0xff]  ;;  %v45_v2 = vld [vmem:[#allocation5] sm:$0xff] }
  0x26   :  { %199 = vmatprep.subr.bf16.mxu0 %v300_v0  ;;  %205 = vmatprep.subr.bf16.mxu1 %v300_v0  ;;  %v44_v3 = vpack.c.bf16 %v43_v1, %v43_v1  ;;  %v46_v4 = vpack.c.bf16 %v45_v2, %v45_v2  ;;  %v137_v5 = vmul.f32 %v43_v1, %v43_v1  ;;  %vm129_vm1 = vcmask 64512   ;;  %s302_s1 = smov [#allocation7]  }
  0x27   :  { %201 = vmatprep.mubr.msk.bf16.mxu0 %vm301_vm0, %v300_v0  ;;  %207 = vmatprep.mubr.msk.bf16.mxu1 %vm301_vm0, %v300_v0  ;;  %v141_v29 = vmul.f32 %v45_v2, %v43_v1  ;;  %vm166_vm2 = vcmask 7168   ;;  %s185_s4 = sshll.u32 %s302_s1, 4  ;;  %s186_s4 = int_to_ptr.vmem [resolvable:$true] %s185_s4 }
  0x28   :  { %200 = vmatpush3.bf16.xpose.msra.mxu0 %v44_v3  ;;  %206 = vmatpush3.bf16.xpose.msra.mxu1 %v46_v4  ;;  %s270_s6 = scalar_lea.vmem %s186_s4, 128  ;;  %p275_p3 = scmp.lt.s32.totalorder %s186_s4, %s186_s4 }
  0x29   :  { %138 = vadd.xlane.f32.xlu1 %v137_v5  ;;  %p271_p2 = scmp.ne.s32.totalorder %s186_s4, %s270_s6  ;;  %p276_p4 = scmp.lt.s32.totalorder %s270_s6, %s270_s6 }
  0x2b   :  { %p277_p5 = por %p276_p4, %p275_p3 }
  0x2d   :  { %p278_p6 = pnand %p277_p5, %p271_p2 }
  0x2f   :  { %202 = vmatmul.mubr.bf16.vlgmr.msra.gmra.mrb[0].mxu0 %v44_v3  ;;  %208 = vmatmul.mubr.bf16.vlgmr.msra.gmra.mrb[0].mxu1 %v44_v3 }
  0xb6   :  { %v139_v30 = vpop.xlane.xlu1 %138 }
  0xb7   :  { %v140_v31 = vmul.f32 2.0, %v139_v30 }
 0x102   :  { %v81_v6 = vpop.f32.mrb[0].mxu0  ;;  %v121_v7 = vpop.f32.mrb[0].mxu1 }
 0x103   :  { %v127_v8 = vmul.f32 2.0, %v81_v6  ;;  %v203_v9 = vpop.f32.mrb[1].mxu0  ;;  %v128_v10 = vmul.f32 2.0, %v121_v7  ;;  %v209_v11 = vpop.f32.mrb[1].mxu1 }
 0x104   :  { %v84_v12 = vpop.f32.mrb[2].mxu0  ;;  %v124_v13 = vpop.f32.mrb[2].mxu1 }
 0x105   :  { %v204_v14 = vpop.f32.mrb[3].mxu0  ;;  %v210_v15 = vpop.f32.mrb[3].mxu1  ;;  %v130_v16 = vsel %vm129_vm1, %v127_v8, -inf  ;;  %v133_v17 = vsel %vm129_vm1, %v128_v10, -inf }
 0x106   :  { %131 = vmax.xlane.f32.xlu0 %v130_v16 }
 0x10a   :  { %134 = vmax.xlane.f32.xlu0 %v133_v17 }
 0x193   :  { %v132_v18 = vpop.xlane.xlu0 %131 }
 0x197   :  { %v135_v19 = vpop.xlane.xlu0 %134 }
 0x198   :  { %v136_v20 = vmax.f32 %v132_v18, %v135_v19 }
 0x19a   :  { %v145_v21 = vsub.f32 %v127_v8, %v136_v20  ;;  %v151_v22 = vsub.f32 %v128_v10, %v136_v20  ;;  %v157_v32 = vsub.f32 %v140_v31, %v136_v20 }
 0x19c   :  { %v146_v23 = vmul.f32 1.442695, %v145_v21  ;;  %v152_v24 = vmul.f32 1.442695, %v151_v22  ;;  %v158_v33 = vmul.f32 1.442695, %v157_v32 }
 0x19e   :  { %218 = vpow2.f32 %v146_v23 }
 0x19f   :  { %220 = vpow2.f32 %v152_v24 }
 0x1a0   :  { %222 = vpow2.f32 %v158_v33 }
 0x1a8   :  { %v219_v25 = vpop.eup %218 }
 0x1a9   :  { %v221_v26 = vpop.eup %220  ;;  %v148_v27 = vsel %vm129_vm1, %v219_v25, 0.0 }
 0x1aa   :  { %v154_v28 = vsel %vm129_vm1, %v221_v26, 0.0  ;;  %149 = vadd.xlane.f32.xlu1 %v148_v27  ;;  %v223_v34 = vpop.eup %222 }
 0x1ab   :  { %155 = vadd.xlane.f32.xlu0 %v154_v28 }
 0x1ae   :  { %142 = vadd.xlane.f32.xlu1 %v141_v29 }
 0x237   :  { %v150_v35 = vpop.xlane.xlu1 %149 }
 0x238   :  { %v160_v36 = vsub.f32 %v150_v35, %v223_v34  ;;  %v156_v37 = vpop.xlane.xlu0 %155 }
 0x23a   :  { %v161_v38 = vadd.f32 %v160_v36, %v156_v37 }
 0x23b   :  { %v143_v39 = vpop.xlane.xlu1 %142 }
 0x23c   :  { %224 = vlog2.f32 %v161_v38  ;;  %v144_v40 = vmul.f32 2.0, %v143_v39 }
 0x23e   :  { %v162_v42 = vsub.f32 %v144_v40, %v136_v20 }
 0x246   :  { %v225_v41 = vpop.eup %224 }
 0x247   :  { %v164_v43 = vmul.f32 0.6931472, %v225_v41 }
 0x249   :  { %v165_v44 = vsub.f32 %v162_v42, %v164_v43 }
 0x24b   :  { %v167_v45 = vsel %vm166_vm2, %v165_v44, 0.0 }
 0x24c   :  { %168 = vadd.xlane.f32.xlu0 %v167_v45 }
 0x2d9   :  { %v169_v46 = vpop.xlane.xlu0 %168 }
 0x2da   :  { %v170_v47 = vrot.slane %v169_v46, 4 }
 0x2dc   :  { %v171_v48 = vadd.f32 %v170_v47, %v169_v46 }
 0x2de   :  { %v172_v49 = vrot.slane %v171_v48, 2 }
 0x2e0   :  { %v173_v50 = vadd.f32 %v172_v49, %v171_v48 }
 0x2e2   :  { %v174_v51 = vrot.slane %v173_v50, 1 }
 0x2e4   :  { %v175_v52 = vadd.f32 %v174_v51, %v173_v50 }
 0x2e6   :  { %211 = vpush %v175_v52 }
 0x317   :  { %s212_s5 = spop %211 }
 0x318   :  { %v177_v53 = vstv %s212_s5 }
 0x319   :  { %178 = vst [vmem:[#allocation7] sm:$0xff] %v177_v53 }
 0x31a   :  { %281 = shalt.err (!%p278_p6)
}
 0x31b   :  { %s282_s9 = scalar_lea.hbm %s360_s2, 128 }
 0x31c   :  { %p283_p7 = scmp.ne.s32.totalorder %s360_s2, %s282_s9  ;;  %p286_p8 = scmp.lt.u32.totalorder %s282_s9, %s360_s2 }
 0x31e   :  { %p288_p9 = pnand %p286_p8, %p283_p7 }
 0x320   :  { %291 = shalt.err (!%p288_p9)
}
 0x321   :  { %188 = dma.vmem_to_hbm [thread:$0]  %s186_s4, 128, %s360_s2, [#allocation4]  }
 0x322   :  { %296 = dma.done.wait [#allocation4], 128  }
 0x323   :  { %297 = vsyncadd [#allocation4], 4294967168 }
 0x324   :  { %192 = vsyncpa [#allocation3], 1 }
 0x325   :  { %193 = vsyncpa [#allocation6], 1 }
 0x326   :  { %194 = vsyncpa [#allocation4], 1 }

// kernel: tpu_custom_call.1
= control target key start
LH: loop header
LB: loop body
LE: loop exit
PB: predicated region body
PF: predicated region fallthrough
CT: control target
= control target key end

     0   :  { %7 = vsyncpa [#allocation3], 0  ;;  %s358_s0 = inlined_call_operand.hbm [shape: f32[8,128], index: 0, kind: input, shape index: {}]   ;;  %s359_s1 = inlined_call_operand.hbm [shape: f32[8,128], index: 1, kind: input, shape index: {}]   ;;  %s360_s2 = inlined_call_operand.hbm [shape: f32[1,8,128], index: 2, kind: output, shape index: {}]  }
   0x1   :  { %8 = vsyncpa [#allocation6], 0 }
   0x2   :  { %9 = vsyncpa [#allocation4], 0  ;;  %s298_s9 = smov [#allocation2]   ;;  %s299_s11 = smov [#allocation5]  }
   0x3   :  { %s16_s10 = sshll.u32 %s298_s9, 4  ;;  %s26_s12 = sshll.u32 %s299_s11, 4  ;;  %s17_s10 = int_to_ptr.vmem [resolvable:$true] %s16_s10  ;;  %s27_s12 = int_to_ptr.vmem [resolvable:$true] %s26_s12 }
   0x4   :  { %s226_s15 = scalar_lea.hbm %s358_s0, 128 }
   0x5   :  { %p227_p0 = scmp.ne.s32.totalorder %s358_s0, %s226_s15  ;;  %p230_p1 = scmp.lt.u32.totalorder %s226_s15, %s358_s0 }
   0x7   :  { %p232_p2 = pnand %p230_p1, %p227_p0 }
   0x9   :  { %235 = shalt.err (!%p232_p2)
}
   0xa   :  { %s236_s20 = scalar_lea.vmem %s17_s10, 128  ;;  %p241_p4 = scmp.lt.s32.totalorder %s17_s10, %s17_s10 }
   0xb   :  { %p237_p3 = scmp.ne.s32.totalorder %s17_s10, %s236_s20  ;;  %p242_p5 = scmp.lt.s32.totalorder %s236_s20, %s236_s20 }
   0xd   :  { %p243_p6 = por %p242_p5, %p241_p4 }
   0xf   :  { %p244_p7 = pnand %p243_p6, %p237_p3 }
  0x11   :  { %247 = shalt.err (!%p244_p7)
}
  0x12   :  { %19 = dma.hbm_to_vmem [thread:$0]  %s358_s0, 128, %s17_s10, [#allocation3]  }
  0x13   :  { %s248_s25 = scalar_lea.hbm %s359_s1, 128 }
  0x14   :  { %p249_p8 = scmp.ne.s32.totalorder %s359_s1, %s248_s25  ;;  %p252_p9 = scmp.lt.u32.totalorder %s248_s25, %s359_s1 }
  0x16   :  { %p254_p10 = pnand %p252_p9, %p249_p8 }
  0x18   :  { %257 = shalt.err (!%p254_p10)
}
  0x19   :  { %s258_s30 = scalar_lea.vmem %s27_s12, 128  ;;  %p263_p12 = scmp.lt.s32.totalorder %s27_s12, %s27_s12 }
  0x1a   :  { %p259_p11 = scmp.ne.s32.totalorder %s27_s12, %s258_s30  ;;  %p264_p13 = scmp.lt.s32.totalorder %s258_s30, %s258_s30 }
  0x1c   :  { %p265_p0 = por %p264_p13, %p263_p12 }
  0x1e   :  { %p266_p1 = pnand %p265_p0, %p259_p11 }
  0x20   :  { %269 = shalt.err (!%p266_p1)
}
  0x21   :  { %29 = dma.hbm_to_vmem [thread:$0]  %s359_s1, 128, %s27_s12, [#allocation6]  }
  0x22   :  { %292 = dma.done.wait [#allocation3], 128  }
  0x23   :  { %293 = vsyncadd [#allocation3], 4294967168 }
  0x24   :  { %294 = dma.done.wait [#allocation6], 128  }
  0x25   :  { %295 = vsyncadd [#allocation6], 4294967168  ;;  %v300_v0 = vmov 0.0   ;;  %vm301_vm0 = vmmov 0   ;;  %v43_v1 = vld [vmem:[#allocation2] sm:$0xff]  ;;  %v45_v2 = vld [vmem:[#allocation5] sm:$0xff] }
  0x26   :  { %199 = vmatprep.subr.bf16.mxu0 %v300_v0  ;;  %205 = vmatprep.subr.bf16.mxu1 %v300_v0  ;;  %v44_v3 = vpack.c.bf16 %v43_v1, %v43_v1  ;;  %v46_v4 = vpack.c.bf16 %v45_v2, %v45_v2  ;;  %v137_v5 = vmul.f32 %v43_v1, %v43_v1  ;;  %vm129_vm1 = vcmask 64512   ;;  %s302_s1 = smov [#allocation7]  }
  0x27   :  { %201 = vmatprep.mubr.msk.bf16.mxu0 %vm301_vm0, %v300_v0  ;;  %207 = vmatprep.mubr.msk.bf16.mxu1 %vm301_vm0, %v300_v0  ;;  %v141_v29 = vmul.f32 %v45_v2, %v43_v1  ;;  %vm166_vm2 = vcmask 7168   ;;  %s185_s4 = sshll.u32 %s302_s1, 4  ;;  %s186_s4 = int_to_ptr.vmem [resolvable:$true] %s185_s4 }
  0x28   :  { %200 = vmatpush3.bf16.xpose.msra.mxu0 %v44_v3  ;;  %206 = vmatpush3.bf16.xpose.msra.mxu1 %v46_v4  ;;  %s270_s6 = scalar_lea.vmem %s186_s4, 128  ;;  %p275_p3 = scmp.lt.s32.totalorder %s186_s4, %s186_s4 }
  0x29   :  { %138 = vadd.xlane.f32.xlu1 %v137_v5  ;;  %p271_p2 = scmp.ne.s32.totalorder %s186_s4, %s270_s6  ;;  %p276_p4 = scmp.lt.s32.totalorder %s270_s6, %s270_s6 }
  0x2b   :  { %p277_p5 = por %p276_p4, %p275_p3 }
  0x2d   :  { %p278_p6 = pnand %p277_p5, %p271_p2 }
  0x2f   :  { %202 = vmatmul.mubr.bf16.vlgmr.msra.gmra.mrb[0].mxu0 %v44_v3  ;;  %208 = vmatmul.mubr.bf16.vlgmr.msra.gmra.mrb[0].mxu1 %v44_v3 }
  0xb6   :  { %v139_v30 = vpop.xlane.xlu1 %138 }
  0xb7   :  { %v140_v31 = vmul.f32 2.0, %v139_v30 }
 0x102   :  { %v81_v6 = vpop.f32.mrb[0].mxu0  ;;  %v121_v7 = vpop.f32.mrb[0].mxu1 }
 0x103   :  { %v127_v8 = vmul.f32 2.0, %v81_v6  ;;  %v203_v9 = vpop.f32.mrb[1].mxu0  ;;  %v128_v10 = vmul.f32 2.0, %v121_v7  ;;  %v209_v11 = vpop.f32.mrb[1].mxu1 }
 0x104   :  { %v84_v12 = vpop.f32.mrb[2].mxu0  ;;  %v124_v13 = vpop.f32.mrb[2].mxu1 }
 0x105   :  { %v204_v14 = vpop.f32.mrb[3].mxu0  ;;  %v210_v15 = vpop.f32.mrb[3].mxu1  ;;  %v130_v16 = vsel %vm129_vm1, %v127_v8, -inf  ;;  %v133_v17 = vsel %vm129_vm1, %v128_v10, -inf }
 0x106   :  { %131 = vmax.xlane.f32.xlu0 %v130_v16 }
 0x10a   :  { %134 = vmax.xlane.f32.xlu0 %v133_v17 }
 0x193   :  { %v132_v18 = vpop.xlane.xlu0 %131 }
 0x197   :  { %v135_v19 = vpop.xlane.xlu0 %134 }
 0x198   :  { %v136_v20 = vmax.f32 %v132_v18, %v135_v19 }
 0x19a   :  { %v145_v21 = vsub.f32 %v127_v8, %v136_v20  ;;  %v151_v22 = vsub.f32 %v128_v10, %v136_v20  ;;  %v157_v32 = vsub.f32 %v140_v31, %v136_v20 }
 0x19c   :  { %v146_v23 = vmul.f32 1.442695, %v145_v21  ;;  %v152_v24 = vmul.f32 1.442695, %v151_v22  ;;  %v158_v33 = vmul.f32 1.442695, %v157_v32 }
 0x19e   :  { %218 = vpow2.f32 %v146_v23 }
 0x19f   :  { %220 = vpow2.f32 %v152_v24 }
 0x1a0   :  { %222 = vpow2.f32 %v158_v33 }
 0x1a8   :  { %v219_v25 = vpop.eup %218 }
 0x1a9   :  { %v221_v26 = vpop.eup %220  ;;  %v148_v27 = vsel %vm129_vm1, %v219_v25, 0.0 }
 0x1aa   :  { %v154_v28 = vsel %vm129_vm1, %v221_v26, 0.0  ;;  %149 = vadd.xlane.f32.xlu1 %v148_v27  ;;  %v223_v34 = vpop.eup %222 }
 0x1ab   :  { %155 = vadd.xlane.f32.xlu0 %v154_v28 }
 0x1ae   :  { %142 = vadd.xlane.f32.xlu1 %v141_v29 }
 0x237   :  { %v150_v35 = vpop.xlane.xlu1 %149 }
 0x238   :  { %v160_v36 = vsub.f32 %v150_v35, %v223_v34  ;;  %v156_v37 = vpop.xlane.xlu0 %155 }
 0x23a   :  { %v161_v38 = vadd.f32 %v160_v36, %v156_v37 }
 0x23b   :  { %v143_v39 = vpop.xlane.xlu1 %142 }
 0x23c   :  { %224 = vlog2.f32 %v161_v38  ;;  %v144_v40 = vmul.f32 2.0, %v143_v39 }
 0x23e   :  { %v162_v42 = vsub.f32 %v144_v40, %v136_v20 }
 0x246   :  { %v225_v41 = vpop.eup %224 }
 0x247   :  { %v164_v43 = vmul.f32 0.6931472, %v225_v41 }
 0x249   :  { %v165_v44 = vsub.f32 %v162_v42, %v164_v43 }
 0x24b   :  { %v167_v45 = vsel %vm166_vm2, %v165_v44, 0.0 }
 0x24c   :  { %168 = vadd.xlane.f32.xlu0 %v167_v45 }
 0x2d9   :  { %v169_v46 = vpop.xlane.xlu0 %168 }
 0x2da   :  { %v170_v47 = vrot.slane %v169_v46, 4 }
 0x2dc   :  { %v171_v48 = vadd.f32 %v170_v47, %v169_v46 }
 0x2de   :  { %v172_v49 = vrot.slane %v171_v48, 2 }
 0x2e0   :  { %v173_v50 = vadd.f32 %v172_v49, %v171_v48 }
 0x2e2   :  { %v174_v51 = vrot.slane %v173_v50, 1 }
 0x2e4   :  { %v175_v52 = vadd.f32 %v174_v51, %v173_v50 }
 0x2e6   :  { %211 = vpush %v175_v52 }
 0x317   :  { %s212_s5 = spop %211 }
 0x318   :  { %v177_v53 = vstv %s212_s5 }
 0x319   :  { %178 = vst [vmem:[#allocation7] sm:$0xff] %v177_v53 }
 0x31a   :  { %281 = shalt.err (!%p278_p6)
}
 0x31b   :  { %s282_s9 = scalar_lea.hbm %s360_s2, 128 }
 0x31c   :  { %p283_p7 = scmp.ne.s32.totalorder %s360_s2, %s282_s9  ;;  %p286_p8 = scmp.lt.u32.totalorder %s282_s9, %s360_s2 }
 0x31e   :  { %p288_p9 = pnand %p286_p8, %p283_p7 }
 0x320   :  { %291 = shalt.err (!%p288_p9)
}
 0x321   :  { %188 = dma.vmem_to_hbm [thread:$0]  %s186_s4, 128, %s360_s2, [#allocation4]  }
 0x322   :  { %296 = dma.done.wait [#allocation4], 128  }
 0x323   :  { %297 = vsyncadd [#allocation4], 4294967168 }
 0x324   :  { %192 = vsyncpa [#allocation3], 1 }
 0x325   :  { %193 = vsyncpa [#allocation6], 1 }
 0x326   :  { %194 = vsyncpa [#allocation4], 1 }

</bundles_post_ra>
